<compile_context>
chip_gen: v7x
topology: tpu7x:2x2x1
jax: 0.10.0
libtpu: 0.0.40
codegen_flags: <defaults>
</compile_context>

<pallas_src>
import functools

import jax
import jax.numpy as jnp
from jax.experimental import pallas as pl
from jax.experimental.pallas import tpu as pltpu


def _round_up(n, m):
    return -(-n // m) * m


def _marginal_kernel(x_ref, y_ref, ld_ref, *, d_total, td, col_mask):
    """Fused elementwise marginal transform + log-det row reduction.

    x_ref  : (TB, TD) input tile
    y_ref  : (TB, TD) marginal_forward(x) tile
    ld_ref : (TB, 1)  f32 accumulator for sum over dim=-1 of log_sigmoid(x);
             same output block across the feature grid axis -> stays resident
             in VMEM and is accumulated into.
    """
    j = pl.program_id(1)

    @pl.when(j == 0)
    def _():
        ld_ref[...] = jnp.zeros_like(ld_ref)

    x_in = x_ref[...]
    # bf16 inputs: keep elementwise math in bf16 (halves vreg/EUP work on
    # v6e/v7x); everything else computes in f32.
    compute_dtype = jnp.bfloat16 if x_in.dtype == jnp.bfloat16 else jnp.float32
    x = x_in.astype(compute_dtype)

    # Stable softplus: softplus(x) = max(x, 0) + log1p(exp(-|x|))
    t = jnp.log1p(jnp.exp(-jnp.abs(x)))
    y = jnp.maximum(x, 0) + t
    y_ref[...] = y.astype(y_ref.dtype)

    # log_sigmoid(x) = x - softplus(x); accumulate the row sum in f32.
    term = (x - y).astype(jnp.float32)
    if col_mask:
        # Ragged last feature block: zero out-of-range columns so garbage
        # input lanes never pollute valid rows' log-det.
        cols = jax.lax.broadcasted_iota(jnp.int32, term.shape, 1) + j * td
        term = jnp.where(cols < d_total, term, 0.0)
    ld_ref[...] += jnp.sum(term, axis=-1, keepdims=True)


def _vmem_limit_bytes():
    """Generation-aware scoped-VMEM limit (75% of physical, leaving headroom
    for the compiler's internal scratch)."""
    try:
        cap = pltpu.get_tpu_info().vmem_capacity_bytes
    except Exception:
        cap = 64 * 1024 * 1024  # conservative (v7x-sized) fallback
    return int(cap * 3 // 4)


def _select_tiles(B, D, itemsize, tile_budget):
    """Pick (row_tile, feature_tile, needs_col_mask) under a per-x-tile byte
    budget.  Double-buffered x + y tiles plus f32 temporaries stay well below
    the scoped VMEM limit (budget ~= limit/10)."""
    row_align = max(8, 32 // itemsize)          # 8 f32, 16 bf16, 32 int8/fp8
    min_row_bytes = row_align * itemsize

    if D * min_row_bytes <= tile_budget:
        td, col_mask = D, False                 # full last dim, always legal
    elif D % 128 == 0:
        max_td = max(128, (tile_budget // min_row_bytes) // 128 * 128)
        td = 128
        for cand in range(min(max_td, D), 127, -128):
            if D % cand == 0:
                td = cand
                break
        col_mask = False
    else:
        # Huge, non-128-multiple D: tile with 128-multiple blocks and mask the
        # ragged last feature block inside the kernel.
        max_td = max(128, (tile_budget // min_row_bytes) // 128 * 128)
        td = min(max_td, _round_up(D, 128))
        col_mask = (D % td) != 0

    max_rows = max(row_align,
                   (tile_budget // (td * itemsize)) // row_align * row_align)
    tb = min(max_rows, _round_up(B, row_align))

    # Guarantee >= 2 blocks along the "parallel" batch axis whenever possible
    # so both v7x TensorCores (megacore sharding) get work.
    if -(-B // tb) < 2 and B > row_align:
        tb = max(row_align, _round_up(-(-B // 2), row_align))

    return tb, td, col_mask


def marginal_transform_forward(x, *, tile_budget=None):
    """Pallas equivalent of MarginalTransform.forward(x) with dim=-1.

    Accepts any rank >= 1; returns (y, log_det) with y.shape == x.shape and
    log_det.shape == x.shape[:-1] (float32).
    """
    orig_shape = x.shape
    D = orig_shape[-1]
    x2 = x.reshape(-1, D)
    B = x2.shape[0]
    itemsize = jnp.dtype(x.dtype).itemsize

    vmem_limit = _vmem_limit_bytes()
    if tile_budget is None:
        tile_budget = min(8 * 1024 * 1024, max(512 * 1024, vmem_limit // 10))

    tb, td, col_mask = _select_tiles(B, D, itemsize, tile_budget)
    grid = (pl.cdiv(B, tb), pl.cdiv(D, td))

    kernel = functools.partial(_marginal_kernel,
                               d_total=D, td=td, col_mask=col_mask)

    cost = pl.CostEstimate(
        flops=6 * B * D,
        transcendentals=2 * B * D,
        bytes_accessed=2 * B * D * itemsize + B * 4,
    )

    y, ld = pl.pallas_call(
        kernel,
        out_shape=(
            jax.ShapeDtypeStruct((B, D), x.dtype),
            jax.ShapeDtypeStruct((B, 1), jnp.float32),
        ),
        grid=grid,
        in_specs=[pl.BlockSpec((tb, td), lambda i, j: (i, j))],
        out_specs=(
            pl.BlockSpec((tb, td), lambda i, j: (i, j)),
            # TODO(synk): could be made lane-dense ((1, tb) blocks of a (1, B)
            # output); minor — this output is only B*4 bytes and the kernel is
            # HBM-bound, so we keep the simple (B, 1) layout.
            pl.BlockSpec((tb, 1), lambda i, j: (i, 0)),
        ),
        compiler_params=pltpu.CompilerParams(
            dimension_semantics=("parallel", "arbitrary"),
            vmem_limit_bytes=vmem_limit,
        ),
        cost_estimate=cost,
    )(x2)

    y = y.reshape(orig_shape)
    log_det = ld[:, 0].reshape(orig_shape[:-1])
    return y, log_det


def _reference_forward(x):
    xf = x.astype(jnp.float32)
    y = jnp.logaddexp(xf, 0.0).astype(x.dtype)
    ld = jnp.sum(-jnp.logaddexp(-xf, 0.0), axis=-1)
    return y, ld


if __name__ == "__main__":
    key = jax.random.PRNGKey(0)
    # Small shapes consistent with the module: leading batch dims + feature
    # dim (self.dim = -1 is reduced for the log-determinant).
    shape = (2, 8, 128)
    x = jax.random.normal(key, shape, dtype=jnp.float32) * 3.0

    y, log_det = marginal_transform_forward(x)
    jax.block_until_ready((y, log_det))
    y_ref, ld_ref = _reference_forward(x)
    assert y.shape == shape and log_det.shape == shape[:-1]
    assert log_det.dtype == jnp.float32
    assert jnp.allclose(y, y_ref, atol=1e-5, rtol=1e-5)
    assert jnp.allclose(log_det, ld_ref, atol=1e-3, rtol=1e-5)

    # Ragged batch (B=5, not a multiple of 8): no pad / slice copies anymore.
    x2 = jax.random.normal(jax.random.PRNGKey(1), (5, 128), dtype=jnp.float32)
    y2, ld2 = marginal_transform_forward(x2)
    jax.block_until_ready((y2, ld2))
    y2r, ld2r = _reference_forward(x2)
    assert jnp.allclose(y2, y2r, atol=1e-5, rtol=1e-5)
    assert jnp.allclose(ld2, ld2r, atol=1e-3, rtol=1e-5)

    # Non-128-multiple feature dim that fits as a single full-width block.
    x3 = jax.random.normal(jax.random.PRNGKey(2), (4, 100), dtype=jnp.float32)
    y3, ld3 = marginal_transform_forward(x3)
    jax.block_until_ready((y3, ld3))
    y3r, ld3r = _reference_forward(x3)
    assert jnp.allclose(y3, y3r, atol=1e-5, rtol=1e-5)
    assert jnp.allclose(ld3, ld3r, atol=1e-3, rtol=1e-5)

    # Tiny forced tile budget: exercises the feature-tiled accumulator path.
    x4 = jax.random.normal(jax.random.PRNGKey(3), (16, 512), dtype=jnp.float32)
    y4, ld4 = marginal_transform_forward(x4, tile_budget=128 * 8 * 4)
    jax.block_until_ready((y4, ld4))
    y4r, ld4r = _reference_forward(x4)
    assert jnp.allclose(y4, y4r, atol=1e-5, rtol=1e-5)
    assert jnp.allclose(ld4, ld4r, atol=1e-3, rtol=1e-5)

    # Tiny forced budget + non-128-multiple D: masked ragged feature block.
    x5 = jax.random.normal(jax.random.PRNGKey(4), (16, 300), dtype=jnp.float32)
    y5, ld5 = marginal_transform_forward(x5, tile_budget=128 * 8 * 4)
    jax.block_until_ready((y5, ld5))
    y5r, ld5r = _reference_forward(x5)
    assert jnp.allclose(y5, y5r, atol=1e-5, rtol=1e-5)
    assert jnp.allclose(ld5, ld5r, atol=1e-3, rtol=1e-5)

    # bf16 path: bf16 elementwise math, f32 log-det accumulation.
    xb = jax.random.normal(jax.random.PRNGKey(5), shape, dtype=jnp.bfloat16) * 3.0
    yb, ldb = marginal_transform_forward(xb)
    jax.block_until_ready((yb, ldb))
    ybr, ldbr = _reference_forward(xb)
    assert yb.dtype == jnp.bfloat16 and ldb.dtype == jnp.float32
    assert jnp.allclose(yb.astype(jnp.float32), ybr.astype(jnp.float32),
                        atol=0.1, rtol=2e-2)
    assert jnp.allclose(ldb, ldbr, atol=1.0, rtol=5e-2)

    print("KERNEL_OK")
</pallas_src>

<mosaic_0001>
module attributes {stable_mosaic.version = 11 : i64} {
  func.func @_marginal_kernel(%arg0: i32, %arg1: i32, %arg2: memref<8x128xf32, #tpu.memory_space<vmem>>, %arg3: memref<8x128xf32, #tpu.memory_space<vmem>>, %arg4: memref<8x1xf32, #tpu.memory_space<vmem>>) attributes {dimension_semantics = [#tpu.dimension_semantics<parallel>, #tpu.dimension_semantics<arbitrary>], iteration_bounds = array<i64: 2, 1>, scalar_prefetch = 0 : i64, scratch_operands = 0 : i64, tpu.core_type = #tpu.core_type<tc>, window_params = [{transform_indices = @transform_0, window_bounds = array<i64: 8, 128>}, {transform_indices = @transform_1, window_bounds = array<i64: 8, 128>}, {transform_indices = @transform_2, window_bounds = array<i64: 8, 1>}]} {
    %c0_i32 = arith.constant 0 : i32
    %0 = arith.cmpi eq, %arg1, %c0_i32 : i32
    %1 = arith.extui %0 : i1 to i32
    %c0_i32_0 = arith.constant 0 : i32
    %2 = arith.cmpi ne, %1, %c0_i32_0 : i32
    scf.if %2 {
      %cst_10 = arith.constant 0.000000e+00 : f32
      %19 = vector.broadcast %cst_10 : f32 to vector<8x1xf32>
      %c0_11 = arith.constant 0 : index
      %c0_12 = arith.constant 0 : index
      %20 = vector.load %arg4[%c0_11, %c0_12] : memref<8x1xf32, #tpu.memory_space<vmem>>, vector<8x1xf32>
      tpu.vector_store %arg4[%c0_11, %c0_12], %19 {strides = array<i32>} : memref<8x1xf32, #tpu.memory_space<vmem>>, vector<8x1xf32>,
    } else {
    }
    %c0 = arith.constant 0 : index
    %c0_1 = arith.constant 0 : index
    %3 = vector.load %arg2[%c0, %c0_1] : memref<8x128xf32, #tpu.memory_space<vmem>>, vector<8x128xf32>
    %4 = math.absf %3 : vector<8x128xf32>
    %cst = arith.constant 0.000000e+00 : f32
    %5 = vector.broadcast %cst : f32 to vector<8x128xf32>
    %6 = arith.subf %5, %4 : vector<8x128xf32>
    %7 = math.exp %6 : vector<8x128xf32>
    %8 = math.log1p %7 : vector<8x128xf32>
    %cst_2 = arith.constant 0.000000e+00 : f32
    %9 = vector.broadcast %cst_2 : f32 to vector<8x128xf32>
    %10 = arith.maximumf %3, %9 : vector<8x128xf32>
    %11 = arith.addf %10, %8 : vector<8x128xf32>
    %c0_3 = arith.constant 0 : index
    %c0_4 = arith.constant 0 : index
    %12 = vector.load %arg3[%c0_3, %c0_4] : memref<8x128xf32, #tpu.memory_space<vmem>>, vector<8x128xf32>
    tpu.vector_store %arg3[%c0_3, %c0_4], %11 {strides = array<i32>} : memref<8x128xf32, #tpu.memory_space<vmem>>, vector<8x128xf32>,
    %13 = arith.subf %3, %11 : vector<8x128xf32>
    %c0_5 = arith.constant 0 : index
    %c0_6 = arith.constant 0 : index
    %14 = vector.load %arg4[%c0_5, %c0_6] : memref<8x1xf32, #tpu.memory_space<vmem>>, vector<8x1xf32>
    %cst_7 = arith.constant dense<0.000000e+00> : vector<8xf32>
    %15 = vector.multi_reduction <add>, %13, %cst_7 [1] : vector<8x128xf32> to vector<8xf32>
    %16 = vector.shape_cast %15 : vector<8xf32> to vector<8x1xf32>
    %17 = arith.addf %14, %16 : vector<8x1xf32>
    %c0_8 = arith.constant 0 : index
    %c0_9 = arith.constant 0 : index
    %18 = vector.load %arg4[%c0_8, %c0_9] : memref<8x1xf32, #tpu.memory_space<vmem>>, vector<8x1xf32>
    tpu.vector_store %arg4[%c0_8, %c0_9], %17 {strides = array<i32>} : memref<8x1xf32, #tpu.memory_space<vmem>>, vector<8x1xf32>,
    return
  }
  func.func @transform_0(%arg0: i32, %arg1: i32) -> (i32, i32) {
    %c0_i32 = arith.constant 0 : i32
    return %arg0, %arg1 : i32, i32
  }
  func.func @transform_1(%arg0: i32, %arg1: i32) -> (i32, i32) {
    %c0_i32 = arith.constant 0 : i32
    return %arg0, %arg1 : i32, i32
  }
  func.func @transform_2(%arg0: i32, %arg1: i32) -> (i32, i32) {
    %c0_i32 = arith.constant 0 : i32
    %c0_i32_0 = arith.constant 0 : i32
    return %arg0, %c0_i32 : i32, i32
  }
}

</mosaic_0001>

<bundles_post_ra>
// kernel: tpu_custom_call.1
= control target key start
LH: loop header
LB: loop body
LE: loop exit
PB: predicated region body
PF: predicated region fallthrough
CT: control target
= control target key end

     0   :  { %8 = vsyncpa [#allocation3], 0  ;;  %s738_s0 = inlined_call_operand.hbm [shape: f32[16,128], index: 0, kind: input, shape index: {}]   ;;  %s739_s1 = inlined_call_operand.hbm [shape: f32[16,128], index: 1, kind: output, shape index: {0}]   ;;  %s740_s2 = inlined_call_operand.vmem [shape: f32[16,1], index: 2, kind: output, shape index: {1}]  }
   0x1   :  { %10 = vsyncpa [#allocation3 + $0x1], 0 }
   0x2   :  { %11 = vsyncpa [#allocation4], 0 }
   0x3   :  { %13 = vsyncpa [#allocation4 + $0x1], 0  ;;  %s556_s9 = smov 0   ;;  %s558_s10 = smov 0  }
   0x4   :  { %s560_s11 = smov 0   ;;  %s562_s12 = smov 0  }
   0x5   :  { %s564_s13 = smov 0   ;;  %s566_s14 = smov 0  }
   0x6 LB: > { %s343_s15 = sadd.s32 4294967295, %s536_s14   ;;  %s344_s16 = sadd.s32 4294967294, %s536_s14   ;;  %s536_s14 = sphi %s566_s14, %s19_s14   ;;  %s532_s13 = sphi %s564_s13, %s756_s13   ;;  %s528_s12 = sphi %s562_s12, %s755_s12   ;;  %s524_s11 = sphi %s560_s11, %s754_s11   ;;  %s520_s10 = sphi %s558_s10, %s753_s10   ;;  %s516_s9 = sphi %s556_s9, %s752_s9  }
   0x7   : > { %s31_s17 = sadd.s32 1, %s532_s13  ;;  %s40_s18 = sadd.s32 1, %s524_s11 }
   0x8   : > { %p33_p0 = scmp.ge.s32.totalorder %s31_s17, 2  ;;  %p47_p1 = scmp.ne.s32.totalorder %s524_s11, %s520_s10 }
   0x9   : > { %p48_p2 = scmp.eq.s32.totalorder %s536_s14, 0  ;;  %p53_p3 = scmp.ne.s32.totalorder %s520_s10, %s516_s9 }
   0xa   : > { %s758_s17 = smov (%p33_p0, %s31_s17), 0  ;;  %p54_p5 = scmp.eq.s32.totalorder %s343_s15, 0 }
   0xb   : > { %p597_p4 = por %p48_p2, %p47_p1  ;;  %s35_s20 = ssub.s32 %s532_s13, %s758_s17 }
   0xc   : > { %p79_p6 = scmp.eq.s32.totalorder %s343_s15, 1  ;;  %p38_p7 = scmp.eq.s32.totalorder %s35_s20, 0 }
   0xd   : > { %p603_p8 = por %p54_p5, %p53_p3  ;;  %p85_p10 = scmp.eq.s32.totalorder %s344_s16, 1 }
   0xe   : > { %p607_p9 = por %p79_p6, %p47_p1  ;;  %p369_p13 = scmp.lt.s32.totalorder %s536_s14, 2 }
   0xf   : > { %s612_s23 = scalar_select %p38_p7, %s524_s11, %s40_s18  }
  0x10   : > { %s744_s22 = scalar_select %p607_p9, 1, 0 }
  0x11   : > { %p614_p11 = por %p85_p10, %p53_p3  ;;  %s131_s25 = sand.u32 1, %s524_s11  }
  0x12   : > { %s347_s26 = sshll.u32 %s131_s25, 3  ;;  %s348_s27 = sshll.u32 %s532_s13, 7 }
  0x13   : > { %s745_s24 = scalar_select %p614_p11, 1, 0 }
  0x14   : > { %s625_s30 = scalar_lea.hbm %s738_s0, %s348_s27  ;;  %s135_s3 = scalar_lea.vmem [#allocation2], %s347_s26 }
  0x15   : > { %s143_s4 = sshll.u32 %s135_s3, 4  ;;  %p631_p0 = pnand %p369_p13, %p597_p4  ;;  %s627_s4 = int_to_ptr.vmem [resolvable:$true] %s143_s4 }
  0x16   : > { %s132_s6 = scalar_lea.sflag [#allocation3], %s131_s25  ;;  %s424_s7 = scalar_lea.hbm %s625_s30, 128 }
  0x17   : > { %p425_p3 = scmp.ne.s32.totalorder %s625_s30, %s424_s7  ;;  %p426_p5 = pneg %p631_p0 }
  0x18   : > { %s429_s16 = scalar_lea.hbm %s738_s0, 256  ;;  %p430_p4 = scmp.lt.u32.totalorder %s625_s30, %s738_s0 }
  0x19   : > { %p427_p6 = pnand %p426_p5, %p425_p3  ;;  %p431_p10 = scmp.lt.u32.totalorder %s429_s16, %s424_s7 }
  0x1a   : > { %p433_p12 = scmp.lt.u32.totalorder %s424_s7, %s625_s30 }
  0x1b   : > { %p428_p7 = pneg %p427_p6  ;;  %p432_p13 = por %p431_p10, %p430_p4 }
  0x1d   : > { %p434_p1 = por %p433_p12, %p432_p13 }
  0x1f   : > { %p435_p2 = pnand %p434_p1, %p428_p7 }
  0x21   : > { %438 = shalt.err (!%p435_p2)
}
  0x22   : > { %s439_s20 = scalar_lea.vmem %s627_s4, 128  ;;  %s538_s25 = smov [#allocation2]  }
  0x23   : > { %p440_p3 = scmp.ne.s32.totalorder %s627_s4, %s439_s20  ;;  %s444_s26 = sshll.u32 %s538_s25, 4  ;;  %s445_s26 = int_to_ptr.vmem [resolvable:$false] %s444_s26 }
  0x24   : > { %s446_s27 = scalar_lea.vmem %s445_s26, 256  ;;  %p447_p9 = scmp.lt.s32.totalorder %s627_s4, %s445_s26 }
  0x25   : > { %p442_p6 = pnand %p440_p3, %p426_p5  ;;  %p448_p4 = scmp.lt.s32.totalorder %s446_s27, %s439_s20 }
  0x27   : > { %p443_p11 = pneg %p442_p6  ;;  %p449_p10 = por %p448_p4, %p447_p9 }
  0x29   : > { %p450_p12 = pnand %p449_p10, %p443_p11 }
  0x2b   : > { %453 = shalt.err (!%p450_p12)
}
  0x2c   : > { %364 = dma.hbm_to_vmem [thread:$0]  (!%p631_p0), %s625_s30, 128, %s627_s4, %s132_s6  }
  0x2d   : > { %p747_p1 = scmp.lt.s32.totalorder %s536_s14, 3  ;;  %p748_p2 = scmp.ge.s32.totalorder %s536_s14, 1 }
  0x2f   : > { %p149_p5 = pnand %p748_p2, %p747_p1 }
  0x30   : > { %s667_s28 = sand.u32 (!%p149_p5), 1, %s520_s10  }
  0x31   : > { %152 = sbr.rel (%p149_p5) target bundleno = 240 (0xf0), region = 24  ;;  %s350_s29 = sshll.u32 (!%p149_p5), %s667_s28, 3 }
  0x32   : > { %s155_s3 = scalar_lea.sflag (!%p149_p5), [#allocation3], %s667_s28  ;;  %s158_s5 = scalar_lea.vmem (!%p149_p5), [#allocation2], %s350_s29 }
  0x38   : > { %507 = dma.done.wait (%p603_p8), %s155_s3, 128  }
  0x39   : > { %509 = vsyncadd (%p603_p8), %s155_s3, 4294967168  ;;  %p183_p9 = scmp.lt.s32.totalorder %s528_s12, 1  ;;  %vm191_vm0 = vcmask 7168   ;;  %v539_v0 = vmov 0.0   ;;  %v193_v1 = vld [vmem:[%s158_s5] sm:$0xff]  ;;  %s176_s21 = scalar_lea.vmem [#allocation5], %s350_s29 }
  0x3a   : > { %v194_v2 = vand.u32 2147483647, %v193_v1  ;;  %v207_v12 = vmax.f32 %v193_v1, 0.0  ;;  %s354_s15 = sshll.u32 %s528_s12, 7  ;;  %s236_s16 = sshll.u32 %s176_s21, 4  ;;  %s237_s16 = int_to_ptr.vmem [resolvable:$true] %s236_s16 }
  0x3b   : > { %s184_s30 = scalar_select %p183_p9, %s528_s12, 1 }
  0x3c   : > { %v195_v3 = vsub.f32 0.0, %v194_v2  ;;  %s692_s20 = scalar_lea.hbm %s739_s1, %s354_s15  ;;  %s218_s25 = scalar_lea.sflag [#allocation4], %s667_s28 }
  0x3d   : > { %s352_s4 = sshll.u32 %s184_s30, 3  ;;  %s454_s26 = scalar_lea.vmem %s237_s16, 128 }
  0x3e   : > { %s682_s8 = scalar_lea.vmem %s740_s2, %s352_s4  ;;  %v196_v4 = vmul.f32 1.442695, %v195_v3  ;;  %p455_p8 = scmp.ne.s32.totalorder %s237_s16, %s454_s26 }
  0x3f   : > { %192 = vst.msk [vmem:[%s682_s8] sm:$0xff] %vm191_vm0, %v539_v0  ;;  %p749_p11 = scmp.ne.s32.totalorder %s744_s22, 0  ;;  %s540_s27 = smov [#allocation5]  }
  0x40   : > { %420 = vpow2.f32 %v196_v4  ;;  %s458_s3 = sshll.u32 %s540_s27, 4  ;;  %s459_s3 = int_to_ptr.vmem [resolvable:$false] %s458_s3 }
  0x41   : > { %p456_p0 = pnand %p455_p8, %p749_p11  ;;  %s460_s5 = scalar_lea.vmem %s459_s3, 256 }
  0x42   : > { %p461_p13 = scmp.lt.s32.totalorder %s237_s16, %s459_s3  ;;  %p462_p3 = scmp.lt.s32.totalorder %s460_s5, %s454_s26 }
  0x43   : > { %p457_p7 = pneg %p456_p0 }
  0x44   : > { %p463_p6 = por %p462_p3, %p461_p13 }
  0x46   : > { %p464_p4 = pnand %p463_p6, %p457_p7 }
  0x4a   : > { %v421_v5 = vpop.eup %420 }
  0x4b   : > { %v198_v6 = vadd.f32 1.0, %v421_v5  ;;  %v201_v7 = vmul.f32 -0.5, %v421_v5  ;;  %v204_v9 = vand.u32 2147483647, %v421_v5 }
  0x4d   : > { %422 = vlog2.f32 %v198_v6  ;;  %v202_v8 = vadd.f32 1.0, %v201_v7  ;;  %vm205_vm1 = vcmp.lt.f32.partialorder %v204_v9, 0.0004427343 }
  0x4f   : > { %v203_v10 = vmul.f32 %v421_v5, %v202_v8 }
  0x57   : > { %v423_v11 = vpop.eup %422 }
  0x58   : > { %v200_v13 = vmul.f32 0.6931472, %v423_v11 }
  0x5a   : > { %v206_v14 = vsel %vm205_vm1, %v203_v10, %v200_v13 }
  0x5b   : > { %v208_v15 = vadd.f32 %v207_v12, %v206_v14 }
  0x5d   : > { %v210_v16 = vsub.f32 %v193_v1, %v208_v15  ;;  %209 = vst [vmem:[%s176_s21] sm:$0xff] %v208_v15 }
  0x5f   : > { %212 = vadd.xlane.f32.xlu0 %v210_v16 }
  0x60   : > { %467 = shalt.err (!%p464_p4)
}
  0x61   : > { %s468_s12 = scalar_lea.hbm %s692_s20, 128  ;;  %s472_s30 = scalar_lea.hbm %s739_s1, 256 }
  0x62   : > { %p469_p10 = scmp.ne.s32.totalorder %s692_s20, %s468_s12  ;;  %p473_p2 = scmp.lt.u32.totalorder %s692_s20, %s739_s1 }
  0x63   : > { %p474_p5 = scmp.lt.u32.totalorder %s472_s30, %s468_s12  ;;  %p476_p8 = scmp.lt.u32.totalorder %s468_s12, %s692_s20 }
  0x64   : > { %p470_p12 = pnand %p469_p10, %p749_p11 }
  0x65   : > { %p475_p9 = por %p474_p5, %p473_p2 }
  0x66   : > { %p471_p1 = pneg %p470_p12 }
  0x67   : > { %p477_p0 = por %p476_p8, %p475_p9 }
  0x69   : > { %p478_p7 = pnand %p477_p0, %p471_p1 }
  0x6b   : > { %481 = shalt.err (!%p478_p7)
}
  0x6c   : > { %359 = dma.vmem_to_hbm [thread:$0]  (%p749_p11), %s237_s16, 128, %s692_s20, %s218_s25   ;;  %v211_v17 = vld [vmem:[%s682_s8] sm:$0xff] }
  0xec   : > { %v213_v18 = vpop.xlane.xlu0 %212 }
  0xed   : > { %v214_v19 = vadd.f32 %v213_v18, %v211_v17 }
  0xef   : > { %216 = vst.msk [vmem:[%s682_s8] sm:$0xff] %vm191_vm0, %v214_v19 }
  0xf0 PF: > { %s251_s7 = sand.u32 1, %s516_s9   ;;  %p750_p13 = scmp.ne.s32.totalorder %s745_s24, 0 }
  0xf1   : > { %p751_p3 = scmp.ge.s32.totalorder %s536_s14, 2  ;;  %s252_s21 = scalar_lea.sflag [#allocation4], %s251_s7 }
  0xf3   : > { %p366_p6 = pnand %p751_p3, %p750_p13 }
  0xf5   : > { %511 = dma.done.wait (!%p366_p6), %s252_s21, 128  }
  0xf6   : > { %513 = vsyncadd (!%p366_p6), %s252_s21, 4294967168  ;;  %s19_s14 = sadd.s32 1, %s536_s14   ;;  %s752_s9 = smov %s520_s10 }
  0xf7   : > { %p16_p4 = scmp.ge.s32.totalorder %s19_s14, 4   ;;  %s753_s10 = smov %s524_s11 }
  0xf8   : > { %s754_s11 = smov %s612_s23  ;;  %s755_s12 = smov %s532_s13 }
  0xf9   : > { %s756_s13 = smov %s758_s17  ;;  %18 = sbr.rel (!%p16_p4) target bundleno = 6 (0x6), region = 85 }
 0x100   :  { %264 = vsyncpa [#allocation3], 1 }
 0x101   :  { %266 = vsyncpa [#allocation3 + $0x1], 1 }
 0x102   :  { %267 = vsyncpa [#allocation4], 1 }
 0x103   :  { %269 = vsyncpa [#allocation4 + $0x1], 1 }

</bundles_post_ra>
